<compile_context>
chip_gen: v6e
topology: v6e:2x2x1
jax: 0.10.0
libtpu: 0.0.40
codegen_flags: <defaults>
</compile_context>

<pallas_src>
import re

import jax
import jax.numpy as jnp
import numpy as np
from jax import lax
from jax.experimental import pallas as pl
from jax.experimental.pallas import tpu as pltpu


# --------------------------------- kernel -----------------------------------
def _make_kernel(bt, h, w, c, cout, use_dense):
    """Kernel body for a (bt, h, w, c) NHWC batch-tile viewed as 2-D slabs."""
    l = w * c          # lane width of the depthwise stage
    r = bt * h         # rows per block
    wcout = w * cout

    def kernel(x_ref, dwp_ref, wpt_ref, t2_ref, o_ref):
        # bf16 slab streamed from HBM; upcast once, compute elementwise in f32
        # (valid on all TPU generations; the DMA bytes are what we halved).
        x = x_ref[...].astype(jnp.float32)                  # (r, l)

        # ---- depthwise (1,3) along W + ReLU (VPU; shifts on the XLU) ------
        # Shifting one W-column == rolling the lane axis by C lanes. Left /
        # right zero padding is folded into dwp rows 0/2 (their boundary lanes
        # are pre-zeroed), so no boundary select is needed.
        xm1 = pltpu.roll(x, c, axis=1)                      # x[:, w-1, :]
        xp1 = pltpu.roll(x, l - c, axis=1)                  # x[:, w+1, :]
        y = (xm1 * dwp_ref[0:1, :] + x * dwp_ref[1:2, :]
             + xp1 * dwp_ref[2:3, :] + dwp_ref[3:4, :])
        y = jnp.maximum(y, 0.0)

        # ---- depthwise (3,1) along H + folded BN(C) + ReLU -----------------
        # Rolling the row axis by 1 shifts H; rows that wrapped across an
        # image boundary are exactly the zero-padded rows -- killed by a
        # per-row {0,1} mask computed in-kernel from an iota (VALU filler,
        # no extra DMA'd operand).
        rows = lax.broadcasted_iota(jnp.int32, (r, 1), 0) % h
        mt = (rows != 0).astype(jnp.float32)                # (r, 1)
        mb = (rows != h - 1).astype(jnp.float32)
        ym1 = pltpu.roll(y, 1, axis=0) * mt                 # y[h-1, :, :]
        yp1 = pltpu.roll(y, r - 1, axis=0) * mb             # y[h+1, :, :]
        z = (ym1 * dwp_ref[4:5, :] + y * dwp_ref[5:6, :]
             + yp1 * dwp_ref[6:7, :] + dwp_ref[7:8, :])     # BN1 folded in
        z = jnp.maximum(z, 0.0)

        # ---- pointwise 1x1 + folded BN(Cout) + ReLU (MXU, bf16 operands) ---
        zb = z.astype(jnp.bfloat16)
        if use_dense:
            # Dense fallback for large W*C*Cout: (r*w, c) @ (c, cout); avoids
            # the W^2-sized block-diagonal weight (storage / DMA / MXU-N).
            acc = jnp.dot(zb.reshape(r * w, c), wpt_ref[...],
                          preferred_element_type=jnp.float32)
            acc = acc.reshape(r, wcout)
        else:
            # Block-diagonal weight keeps operands and result lane-dense
            # (last dims W*C and W*Cout), so stores are unmasked.
            acc = jnp.dot(zb, wpt_ref[...], preferred_element_type=jnp.float32)
        o_ref[...] = jnp.maximum(acc + t2_ref[...], 0.0).astype(o_ref.dtype)

    return kernel


# -------------------------------- wrapper ------------------------------------
def _tpu_generation():
    """Best-effort TPU generation (5/6/7/...); 0 if unknown."""
    try:
        kind = jax.devices()[0].device_kind
    except Exception:
        return 0
    m = re.search(r"(\d+)", kind)
    return int(m.group(1)) if m else 0


def _pick_bt(batch, h, bytes_per_image, target_bytes, prefer_even_steps,
             sublane_multiple=16):
    """Choose a batch-tile size.

    Only considers tiles whose row count is sublane-aligned (or that span the
    whole batch), never collapses the grid to one step when batch > 1, picks
    the largest tile under `target_bytes`, and (on v7x) prefers an even number
    of grid steps so both TensorCores get balanced work.
    """
    cands = [bt for bt in range(1, batch + 1)
             if batch % bt == 0
             and ((bt * h) % sublane_multiple == 0 or bt == batch)]
    multi = [bt for bt in cands if batch // bt >= 2]
    pool = multi if multi else cands                  # bt == batch always legal
    fitting = [bt for bt in pool if bt * bytes_per_image <= target_bytes]
    if not fitting:
        fitting = [min(pool)]
    if prefer_even_steps:
        even = [bt for bt in fitting if (batch // bt) % 2 == 0]
        if even:
            fitting = even
    return max(fitting)


@jax.jit
def dwconv2d_pallas(x_nhwc, dwp, wpt, t2p):
    """x_nhwc: (B, H, W, C) (any float dtype; streamed as bf16).
    Returns (B, H, W, Cout) bf16, NHWC end-to-end."""
    B, H, W, C = x_nhwc.shape
    L = W * C
    WCout = t2p.shape[1]
    assert WCout % W == 0, "t2p lane width must be W * Cout"
    Cout = WCout // W
    use_dense = tuple(wpt.shape) == (C, Cout) and L != C
    if not use_dense:
        assert tuple(wpt.shape) == (L, WCout), "unexpected 1x1 weight shape"

    # Per-generation tile / VMEM budgets: bigger on 128-MiB v5e/v6e parts,
    # conservative on v7x (64 MiB physical, 2 TCs -> prefer even step counts).
    gen = _tpu_generation()
    if gen >= 7:
        target_bytes, vmem_limit, prefer_even = 2 << 20, 32 << 20, True
    elif gen in (5, 6):
        target_bytes, vmem_limit, prefer_even = 6 << 20, 64 << 20, False
    else:
        target_bytes, vmem_limit, prefer_even = 2 << 20, 32 << 20, False

    bytes_per_image = (L + WCout) * H * 2             # bf16 in + out per image
    bt = _pick_bt(B, H, bytes_per_image, target_bytes, prefer_even)
    nb = B // bt
    R = bt * H

    # Free reshape: contiguous NHWC already is the 2-D slab layout we want.
    x2 = x_nhwc.reshape(B * H, L).astype(jnp.bfloat16)

    out2 = pl.pallas_call(
        _make_kernel(bt, H, W, C, Cout, use_dense),
        out_shape=jax.ShapeDtypeStruct((B * H, WCout), jnp.bfloat16),
        grid_spec=pltpu.PrefetchScalarGridSpec(
            num_scalar_prefetch=0,
            grid=(nb,),
            in_specs=[
                pl.BlockSpec((R, L), lambda b: (b, 0)),         # image slab
                pl.BlockSpec((8, L), lambda b: (0, 0)),         # dw taps/biases
                pl.BlockSpec(tuple(wpt.shape), lambda b: (0, 0)),  # 1x1 weight
                pl.BlockSpec((1, WCout), lambda b: (0, 0)),     # 1x1 bias/shift
            ],
            out_specs=pl.BlockSpec((R, WCout), lambda b: (b, 0)),
        ),
        compiler_params=pltpu.CompilerParams(
            dimension_semantics=("parallel",),
            vmem_limit_bytes=vmem_limit,
        ),
    )(x2, dwp, wpt, t2p)

    return out2.reshape(B, H, W, Cout)


# --------------------- wrapper-side constant folding -------------------------
def _use_dense_pointwise(W, C, Cout, threshold_bytes=4 << 20):
    """Switch to the dense (C, Cout) matmul when the block-diagonal bf16
    weight (W*C, W*Cout) would exceed `threshold_bytes` (it scales as W^2)."""
    return (W * C) * (W * Cout) * 2 > threshold_bytes


def pack_params(params, W):
    """Fold BN scales/shifts and W-boundary padding into 3 packed tensors."""
    (w1, b1, w2, b2, s1, t1, wp, bp, s2, t2) = params
    C = w1.shape[1]
    Cout = wp.shape[1]
    L = W * C

    # Fold BatchNorm(C) into the (3,1) depthwise taps and bias.
    w2f = w2 * s1                     # (3, C)
    b2f = b2 * s1 + t1                # (1, C)

    def lane_tile(v):                 # (C,) -> (L,): lane w*C + c holds v[c]
        return jnp.tile(v, W)

    dwp = jnp.stack([
        lane_tile(w1[0]).at[:C].set(0.0),             # left tap: col 0 is pad
        lane_tile(w1[1]),
        lane_tile(w1[2]).at[(W - 1) * C:].set(0.0),   # right tap: col W-1 pad
        lane_tile(b1[0]),
        lane_tile(w2f[0]),
        lane_tile(w2f[1]),
        lane_tile(w2f[2]),
        lane_tile(b2f[0]),
    ], axis=0).astype(jnp.float32)                    # (8, L)

    # Pointwise 1x1 with BN(Cout) scale folded in; stored in bf16 (MXU operand).
    wps = wp * s2                                     # (C, Cout)
    if _use_dense_pointwise(W, C, Cout):
        wpt = wps.astype(jnp.bfloat16)                # dense fallback weight
    else:
        # Block-diagonal expansion: matmul maps (.., W*C) -> (.., W*Cout)
        # lane-dense slabs directly (unmasked stores).
        wpt = (jnp.eye(W, dtype=jnp.float32)[:, None, :, None]
               * wps[None, :, None, :]).reshape(L, W * Cout).astype(jnp.bfloat16)
    t2p = jnp.tile(bp * s2 + t2, (1, W)).astype(jnp.float32)   # (1, W*Cout)
    return dwp, wpt, t2p


# ---------------- pure-JAX reference (NHWC) for validation -------------------
def dwconv2d_ref(x_nhwc, params):
    (w1, b1, w2, b2, s1, t1, wp, bp, s2, t2) = params
    C = x_nhwc.shape[-1]
    dn = ("NHWC", "HWIO", "NHWC")

    y = lax.conv_general_dilated(x_nhwc, w1.reshape(1, 3, 1, C), (1, 1),
                                 [(0, 0), (1, 1)], dimension_numbers=dn,
                                 feature_group_count=C)
    y = jnp.maximum(y + b1[0], 0.0)

    z = lax.conv_general_dilated(y, w2.reshape(3, 1, 1, C), (1, 1),
                                 [(1, 1), (0, 0)], dimension_numbers=dn,
                                 feature_group_count=C)
    z = jnp.maximum((z + b2[0]) * s1[0] + t1[0], 0.0)

    o = jnp.einsum('bhwc,co->bhwo', z, wp) + bp[0]
    return jnp.maximum(o * s2[0] + t2[0], 0.0)


def make_params(key, C, Cout):
    ks = jax.random.split(key, 12)
    w1 = jax.random.normal(ks[0], (3, C), jnp.float32) * 0.3
    b1 = jax.random.normal(ks[1], (1, C), jnp.float32) * 0.1
    w2 = jax.random.normal(ks[2], (3, C), jnp.float32) * 0.3
    b2 = jax.random.normal(ks[3], (1, C), jnp.float32) * 0.1
    wp = jax.random.normal(ks[4], (C, Cout), jnp.float32) * 0.3
    bp = jax.random.normal(ks[5], (1, Cout), jnp.float32) * 0.1

    eps = 1e-5
    # BatchNorm2d(C) inference params -> folded scale/shift
    g1 = 1.0 + 0.1 * jax.random.normal(ks[6], (C,), jnp.float32)
    be1 = 0.1 * jax.random.normal(ks[7], (C,), jnp.float32)
    m1 = 0.1 * jax.random.normal(ks[8], (C,), jnp.float32)
    v1 = jax.random.uniform(ks[9], (C,), jnp.float32, 0.5, 1.5)
    s1 = (g1 / jnp.sqrt(v1 + eps)).reshape(1, C)
    t1 = (be1 - m1 * g1 / jnp.sqrt(v1 + eps)).reshape(1, C)

    # BatchNorm2d(Cout)
    g2 = 1.0 + 0.1 * jax.random.normal(ks[10], (Cout,), jnp.float32)
    be2 = 0.1 * jax.random.normal(ks[11], (Cout,), jnp.float32)
    m2 = jnp.zeros((Cout,), jnp.float32)
    v2 = jnp.ones((Cout,), jnp.float32)
    s2 = (g2 / jnp.sqrt(v2 + eps)).reshape(1, Cout)
    t2 = (be2 - m2 * g2 / jnp.sqrt(v2 + eps)).reshape(1, Cout)

    return (w1, b1, w2, b2, s1, t1, wp, bp, s2, t2)


if __name__ == "__main__":
    B, C, H, W = 2, 8, 16, 16
    Cout = 16

    key = jax.random.PRNGKey(0)
    kx, kp = jax.random.split(key)
    x = jax.random.normal(kx, (B, H, W, C), jnp.float32)   # NHWC end-to-end
    params = make_params(kp, C, Cout)
    dwp, wpt, t2p = pack_params(params, W)                 # one-time folding

    # The kernel streams bf16 activations; feed it (and the reference) the same
    # bf16-quantized input so only the kernel's bf16 MXU operands / bf16 output
    # cast remain as sources of divergence (tolerance loosened accordingly).
    x_bf16 = x.astype(jnp.bfloat16)

    out = dwconv2d_pallas(x_bf16, dwp, wpt, t2p)
    out = jax.block_until_ready(out)

    ref = dwconv2d_ref(x_bf16.astype(jnp.float32), params)
    np.testing.assert_allclose(np.asarray(out.astype(jnp.float32)),
                               np.asarray(ref), rtol=2e-2, atol=5e-2)
    print("KERNEL_OK")
</pallas_src>

<mosaic_0001>
module attributes {stable_mosaic.version = 11 : i64} {
  func.func @kernel(%arg0: i32, %arg1: memref<16x128xbf16, #tpu.memory_space<vmem>>, %arg2: memref<8x128xf32, #tpu.memory_space<vmem>>, %arg3: memref<128x256xbf16, #tpu.memory_space<vmem>>, %arg4: memref<1x256xf32, #tpu.memory_space<vmem>>, %arg5: memref<16x256xbf16, #tpu.memory_space<vmem>>) attributes {dimension_semantics = [#tpu.dimension_semantics<parallel>], iteration_bounds = array<i64: 2>, scalar_prefetch = 0 : i64, scratch_operands = 0 : i64, tpu.core_type = #tpu.core_type<tc>, window_params = [{transform_indices = @transform_0, window_bounds = array<i64: 16, 128>}, {pipeline_mode = #tpu.pipeline_mode<synchronous>, transform_indices = @transform_1, window_bounds = array<i64: 8, 128>}, {pipeline_mode = #tpu.pipeline_mode<synchronous>, transform_indices = @transform_2, window_bounds = array<i64: 128, 256>}, {pipeline_mode = #tpu.pipeline_mode<synchronous>, transform_indices = @transform_3, window_bounds = array<i64: 1, 256>}, {transform_indices = @transform_4, window_bounds = array<i64: 16, 256>}]} {
    %c0 = arith.constant 0 : index
    %c0_0 = arith.constant 0 : index
    %0 = vector.load %arg1[%c0, %c0_0] : memref<16x128xbf16, #tpu.memory_space<vmem>>, vector<16x128xbf16>
    %1 = arith.extf %0 : vector<16x128xbf16> to vector<16x128xf32>
    %c8_i32 = arith.constant 8 : i32
    %2 = tpu.dynamic_rotate %1 by %c8_i32 dim 1 : vector<16x128xf32>, i32 -> vector<16x128xf32>
    %c120_i32 = arith.constant 120 : i32
    %3 = tpu.dynamic_rotate %1 by %c120_i32 dim 1 : vector<16x128xf32>, i32 -> vector<16x128xf32>
    %c0_1 = arith.constant 0 : index
    %c0_2 = arith.constant 0 : index
    %4 = vector.load %arg2[%c0_1, %c0_2] : memref<8x128xf32, #tpu.memory_space<vmem>>, vector<1x128xf32>
    %5 = vector.broadcast %4 : vector<1x128xf32> to vector<16x128xf32>
    %6 = arith.mulf %2, %5 : vector<16x128xf32>
    %c1 = arith.constant 1 : index
    %c0_3 = arith.constant 0 : index
    %7 = vector.load %arg2[%c1, %c0_3] : memref<8x128xf32, #tpu.memory_space<vmem>>, vector<1x128xf32>
    %8 = vector.broadcast %7 : vector<1x128xf32> to vector<16x128xf32>
    %9 = arith.mulf %1, %8 : vector<16x128xf32>
    %10 = arith.addf %6, %9 : vector<16x128xf32>
    %c2 = arith.constant 2 : index
    %c0_4 = arith.constant 0 : index
    %11 = vector.load %arg2[%c2, %c0_4] : memref<8x128xf32, #tpu.memory_space<vmem>>, vector<1x128xf32>
    %12 = vector.broadcast %11 : vector<1x128xf32> to vector<16x128xf32>
    %13 = arith.mulf %3, %12 : vector<16x128xf32>
    %14 = arith.addf %10, %13 : vector<16x128xf32>
    %c3 = arith.constant 3 : index
    %c0_5 = arith.constant 0 : index
    %15 = vector.load %arg2[%c3, %c0_5] : memref<8x128xf32, #tpu.memory_space<vmem>>, vector<1x128xf32>
    %16 = vector.broadcast %15 : vector<1x128xf32> to vector<16x128xf32>
    %17 = arith.addf %14, %16 : vector<16x128xf32>
    %cst = arith.constant 0.000000e+00 : f32
    %18 = vector.broadcast %cst : f32 to vector<16x128xf32>
    %19 = arith.maximumf %17, %18 : vector<16x128xf32>
    %20 = tpu.iota {dimensions = array<i32: 0>} : vector<16x1xi32>
    %c16_i32 = arith.constant 16 : i32
    %c0_i32 = arith.constant 0 : i32
    %21 = arith.cmpi eq, %c16_i32, %c0_i32 : i32
    %c1_i32 = arith.constant 1 : i32
    %22 = arith.select %21, %c1_i32, %c16_i32 : i32
    %23 = vector.broadcast %22 : i32 to vector<16x1xi32>
    %24 = arith.remsi %20, %23 : vector<16x1xi32>
    %c0_i32_6 = arith.constant 0 : i32
    %25 = vector.broadcast %c0_i32_6 : i32 to vector<16x1xi32>
    %26 = arith.cmpi ne, %24, %25 : vector<16x1xi32>
    %c0_i32_7 = arith.constant 0 : i32
    %27 = vector.broadcast %c0_i32_7 : i32 to vector<16x1xi32>
    %28 = arith.cmpi slt, %24, %27 : vector<16x1xi32>
    %c0_i32_8 = arith.constant 0 : i32
    %29 = arith.cmpi slt, %22, %c0_i32_8 : i32
    %30 = vector.broadcast %29 : i1 to vector<16x1xi1>
    %31 = vector.broadcast %30 : vector<16x1xi1> to vector<16x1xi1>
    %32 = arith.xori %28, %31 : vector<16x1xi1>
    %33 = arith.andi %32, %26 : vector<16x1xi1>
    %34 = vector.broadcast %22 : i32 to vector<16x1xi32>
    %35 = arith.addi %24, %34 : vector<16x1xi32>
    %36 = arith.select %33, %35, %24 : vector<16x1xi1>, vector<16x1xi32>
    %c0_i32_9 = arith.constant 0 : i32
    %37 = vector.broadcast %c0_i32_9 : i32 to vector<16x1xi32>
    %38 = arith.cmpi ne, %36, %37 : vector<16x1xi32>
    %39 = arith.extui %38 : vector<16x1xi1> to vector<16x1xi32>
    %40 = arith.sitofp %39 : vector<16x1xi32> to vector<16x1xf32>
    %c15_i32 = arith.constant 15 : i32
    %41 = vector.broadcast %c15_i32 : i32 to vector<16x1xi32>
    %42 = arith.cmpi ne, %36, %41 : vector<16x1xi32>
    %43 = arith.extui %42 : vector<16x1xi1> to vector<16x1xi32>
    %44 = arith.sitofp %43 : vector<16x1xi32> to vector<16x1xf32>
    %c1_i32_10 = arith.constant 1 : i32
    %45 = tpu.dynamic_rotate %19 by %c1_i32_10 dim 0 : vector<16x128xf32>, i32 -> vector<16x128xf32>
    %46 = vector.broadcast %40 : vector<16x1xf32> to vector<16x128xf32>
    %47 = arith.mulf %45, %46 : vector<16x128xf32>
    %c15_i32_11 = arith.constant 15 : i32
    %48 = tpu.dynamic_rotate %19 by %c15_i32_11 dim 0 : vector<16x128xf32>, i32 -> vector<16x128xf32>
    %49 = vector.broadcast %44 : vector<16x1xf32> to vector<16x128xf32>
    %50 = arith.mulf %48, %49 : vector<16x128xf32>
    %c4 = arith.constant 4 : index
    %c0_12 = arith.constant 0 : index
    %51 = vector.load %arg2[%c4, %c0_12] : memref<8x128xf32, #tpu.memory_space<vmem>>, vector<1x128xf32>
    %52 = vector.broadcast %51 : vector<1x128xf32> to vector<16x128xf32>
    %53 = arith.mulf %47, %52 : vector<16x128xf32>
    %c5 = arith.constant 5 : index
    %c0_13 = arith.constant 0 : index
    %54 = vector.load %arg2[%c5, %c0_13] : memref<8x128xf32, #tpu.memory_space<vmem>>, vector<1x128xf32>
    %55 = vector.broadcast %54 : vector<1x128xf32> to vector<16x128xf32>
    %56 = arith.mulf %19, %55 : vector<16x128xf32>
    %57 = arith.addf %53, %56 : vector<16x128xf32>
    %c6 = arith.constant 6 : index
    %c0_14 = arith.constant 0 : index
    %58 = vector.load %arg2[%c6, %c0_14] : memref<8x128xf32, #tpu.memory_space<vmem>>, vector<1x128xf32>
    %59 = vector.broadcast %58 : vector<1x128xf32> to vector<16x128xf32>
    %60 = arith.mulf %50, %59 : vector<16x128xf32>
    %61 = arith.addf %57, %60 : vector<16x128xf32>
    %c7 = arith.constant 7 : index
    %c0_15 = arith.constant 0 : index
    %62 = vector.load %arg2[%c7, %c0_15] : memref<8x128xf32, #tpu.memory_space<vmem>>, vector<1x128xf32>
    %63 = vector.broadcast %62 : vector<1x128xf32> to vector<16x128xf32>
    %64 = arith.addf %61, %63 : vector<16x128xf32>
    %cst_16 = arith.constant 0.000000e+00 : f32
    %65 = vector.broadcast %cst_16 : f32 to vector<16x128xf32>
    %66 = arith.maximumf %64, %65 : vector<16x128xf32>
    %67 = arith.truncf %66 : vector<16x128xf32> to vector<16x128xbf16>
    %c0_17 = arith.constant 0 : index
    %c0_18 = arith.constant 0 : index
    %68 = vector.load %arg3[%c0_17, %c0_18] : memref<128x256xbf16, #tpu.memory_space<vmem>>, vector<128x256xbf16>
    %cst_19 = arith.constant dense<0.000000e+00> : vector<16x256xf32>
    %69 = tpu.matmul %67, %68, %cst_19 {dimension_numbers = #tpu.dot_dimension_numbers<[1], [0], [0], [1], [0, 0, 1, 1], [], []>} : vector<16x128xbf16>, vector<128x256xbf16>, vector<16x256xf32> -> vector<16x256xf32>
    %c0_20 = arith.constant 0 : index
    %c0_21 = arith.constant 0 : index
    %70 = vector.load %arg4[%c0_20, %c0_21] : memref<1x256xf32, #tpu.memory_space<vmem>>, vector<1x256xf32>
    %71 = vector.broadcast %70 : vector<1x256xf32> to vector<16x256xf32>
    %72 = arith.addf %69, %71 : vector<16x256xf32>
    %cst_22 = arith.constant 0.000000e+00 : f32
    %73 = vector.broadcast %cst_22 : f32 to vector<16x256xf32>
    %74 = arith.maximumf %72, %73 : vector<16x256xf32>
    %75 = arith.truncf %74 : vector<16x256xf32> to vector<16x256xbf16>
    %c0_23 = arith.constant 0 : index
    %c0_24 = arith.constant 0 : index
    %76 = vector.load %arg5[%c0_23, %c0_24] : memref<16x256xbf16, #tpu.memory_space<vmem>>, vector<16x256xbf16>
    tpu.vector_store %arg5[%c0_23, %c0_24], %75 {strides = array<i32>} : memref<16x256xbf16, #tpu.memory_space<vmem>>, vector<16x256xbf16>,
    return
  }
  func.func @transform_0(%arg0: i32) -> (i32, i32) {
    %c0_i32 = arith.constant 0 : i32
    %c0_i32_0 = arith.constant 0 : i32
    return %arg0, %c0_i32 : i32, i32
  }
  func.func @transform_1(%arg0: i32) -> (i32, i32) {
    %c0_i32 = arith.constant 0 : i32
    %c0_i32_0 = arith.constant 0 : i32
    %c0_i32_1 = arith.constant 0 : i32
    return %c0_i32, %c0_i32_0 : i32, i32
  }
  func.func @transform_2(%arg0: i32) -> (i32, i32) {
    %c0_i32 = arith.constant 0 : i32
    %c0_i32_0 = arith.constant 0 : i32
    %c0_i32_1 = arith.constant 0 : i32
    return %c0_i32, %c0_i32_0 : i32, i32
  }
  func.func @transform_3(%arg0: i32) -> (i32, i32) {
    %c0_i32 = arith.constant 0 : i32
    %c0_i32_0 = arith.constant 0 : i32
    %c0_i32_1 = arith.constant 0 : i32
    return %c0_i32, %c0_i32_0 : i32, i32
  }
  func.func @transform_4(%arg0: i32) -> (i32, i32) {
    %c0_i32 = arith.constant 0 : i32
    %c0_i32_0 = arith.constant 0 : i32
    return %arg0, %c0_i32 : i32, i32
  }
}

</mosaic_0001>

<bundles_post_ra>
// kernel: dwconv2d_pallas.1
= control target key start
LH: loop header
LB: loop body
LE: loop exit
PB: predicated region body
PF: predicated region fallthrough
CT: control target
= control target key end

     0   :  { %s695_s15 = smov 0   ;;  %s799_s0 = inlined_call_operand.vmem [shape: bf16[32,128], index: 0, kind: input, shape index: {}]   ;;  %s800_s1 = inlined_call_operand.vmem [shape: f32[8,128], index: 1, kind: input, shape index: {}]   ;;  %s801_s2 = inlined_call_operand.vmem [shape: bf16[128,256], index: 2, kind: input, shape index: {}]   ;;  %s802_s3 = inlined_call_operand.vmem [shape: f32[1,256], index: 3, kind: input, shape index: {}]   ;;  %s803_s4 = inlined_call_operand.vmem [shape: bf16[32,256], index: 4, kind: output, shape index: {}]  }
   0x1 LB: > { %s565_s16 = sadd.s32 4294967295, %s664_s15   ;;  %p569_p0 = scmp.ge.s32.totalorder %s664_s15, 1  ;;  %s664_s15 = sphi %s695_s15, %s14_s15  }
   0x2   : > { %p163_p1 = scmp.lt.s32.totalorder %s664_s15, 3 }
   0x4   : > { %p164_p2 = pnand %p569_p0, %p163_p1 }
   0x5   : > { %s570_s17 = sshll.u32 (!%p164_p2), %s565_s16, 1  ;;  %s666_s10 = smov (!%p164_p2), 8  }
   0x6   : > { %167 = sbr.rel (%p164_p2) target bundleno = 371 (0x173), region = 36  ;;  %p191_p3 = scmp.lt.s32.totalorder (!%p164_p2), %s570_s17, 3 }
   0x7   : > { %s667_s16 = smov (!%p164_p2), 120  }
   0xb   : > { %v634_v0 = vld [vmem:[%s801_s2 + $0x74] ss:$8 sps:$4 sm:$0xff]   ;;  %v636_v1 = vld [vmem:[%s801_s2 + $0x70] ss:$8 sps:$4 sm:$0xff]   ;;  %s805_s17 = smov (!%p191_p3, %s570_s17), 3  ;;  %v668_v15 = vmov 0   ;;  %v250_v21 = vlaneseq }
   0xc   : > { %446 = vmatprep.subr.bf16.mxu0 %v634_v0  ;;  %v637_v2 = vld [vmem:[%s801_s2 + $0x64] ss:$8 sps:$4 sm:$0xff]   ;;  %v639_v3 = vld [vmem:[%s801_s2 + $0x60] ss:$8 sps:$4 sm:$0xff]   ;;  %s571_s26 = sshll.u32 %s805_s17, 2  ;;  %478 = vmatprep.mubr.bf16.mxu0 %v668_v15  ;;  %v669_v51 = vmov 0.0  }
   0xd   : > { %447 = vmatpush1.bf16.msra.mxu0 %v636_v1  ;;  %v640_v4 = vld [vmem:[%s801_s2 + $0x54] ss:$8 sps:$4 sm:$0xff]   ;;  %s194_s5 = scalar_lea.vmem %s799_s0, %s571_s26  ;;  %v642_v5 = vld [vmem:[%s801_s2 + $0x50] ss:$8 sps:$4 sm:$0xff]   ;;  %v643_v9 = vld [vmem:[%s801_s2 + $0x44] ss:$8 sps:$4 sm:$0xff]  }
   0xe   : > { %448 = vmatprep.subr.bf16.mxu0 %v637_v2  ;;  %v609_v6 = vld [vmem:[%s194_s5] sm:$0xff]   ;;  %v646_v12 = vld [vmem:[%s801_s2 + $0x34] ss:$8 sps:$4 sm:$0xff]   ;;  %v648_v13 = vld [vmem:[%s801_s2 + $0x30] ss:$8 sps:$4 sm:$0xff]   ;;  %v757_v22 = vshrl.u32 %v250_v21, 7 }
   0xf   : > { %v610_v7 = vunpack.c.l.bf16 %v609_v6  ;;  %v611_v8 = vunpack.c.h.bf16 %v609_v6  ;;  %v645_v11 = vld [vmem:[%s801_s2 + $0x40] ss:$8 sps:$4 sm:$0xff]   ;;  %v649_v14 = vld [vmem:[%s801_s2 + $0x24] ss:$8 sps:$4 sm:$0xff]   ;;  %v652_v17 = vld [vmem:[%s801_s2 + $0x14] ss:$8 sps:$4 sm:$0xff]  }
  0x10   : > { %v651_v16 = vld [vmem:[%s801_s2 + $0x20] ss:$8 sps:$4 sm:$0xff]   ;;  %v654_v18 = vld [vmem:[%s801_s2 + $0x10] ss:$8 sps:$4 sm:$0xff]   ;;  %v655_v19 = vld [vmem:[%s801_s2 + $0x4] ss:$8 sps:$4 sm:$0xff]  }
  0x11   : > { %449 = vmatpush1.bf16.msra.mxu0 %v639_v3  ;;  %v624_v10 = vpack.i.bf16 %v611_v8, %v610_v7  ;;  %v657_v20 = vld [vmem:[%s801_s2] ss:$8 sps:$4 sm:$0xff]   ;;  %v252_v28 = vadd.s32 8, %v757_v22  ;;  %v257_v37 = vand.u32 15, %v757_v22  ;;  %v582_v50 = vld [vmem:[%s800_s1 + $0x5] ss:$0 sm:$0xff] }
  0x12   : > { %450 = vmatprep.subr.bf16.mxu0 %v640_v4  ;;  %v575_v23 = vld [vmem:[%s800_s1] ss:$0 sm:$0xff]  ;;  %v576_v24 = vld [vmem:[%s800_s1 + $0x1] ss:$0 sm:$0xff]  ;;  %v577_v33 = vld [vmem:[%s800_s1 + $0x2] ss:$0 sm:$0xff] }
  0x13   : > { %625 = vrot.lane.b32.xlu0 %v624_v10, %s666_s10  ;;  %v229_v29 = vmul.f32 %v611_v8, %v576_v24  ;;  %v228_v32 = vmul.f32 %v610_v7, %v576_v24  ;;  %v264_v38 = vand.u32 15, %v252_v28  ;;  %v578_v43 = vld [vmem:[%s800_s1 + $0x3] ss:$0 sm:$0xff]  ;;  %vm277_vm0 = vcmp.ne.s32.totalorder %v257_v37, 0  ;;  %v581_v58 = vld [vmem:[%s800_s1 + $0x4] ss:$0 sm:$0xff] }
  0x14   : > { %v579_v52 = vsel %vm277_vm0, 1.0, %v669_v51  ;;  %vm291_vm2 = vcmp.lt.s32.totalorder %v757_v22, 1  ;;  %vm298_vm3 = vcmp.lt.s32.totalorder %v757_v22, 7  ;;  %v583_v3 = vld [vmem:[%s800_s1 + $0x6] ss:$0 sm:$0xff]  ;;  %s605_s26 = sshll.u32 %s805_s17, 3 }
  0x15   : > { %451 = vmatpush1.bf16.msra.mxu0 %v642_v5  ;;  %vm284_vm1 = vcmp.ne.s32.totalorder %v264_v38, 15  ;;  %v584_v8 = vld [vmem:[%s800_s1 + $0x7] ss:$0 sm:$0xff]  ;;  %s201_s29 = scalar_lea.vmem %s803_s4, %s605_s26 }
  0x16   : > { %452 = vmatprep.subr.bf16.mxu0 %v643_v9  ;;  %v580_v53 = vsel %vm284_vm1, 1.0, %v669_v51 }
  0x17   : > { %630 = vrot.lane.b32.xlu0 %v624_v10, %s667_s16 }
  0x19   : > { %453 = vmatpush1.bf16.msra.mxu0 %v645_v11 }
  0x1a   : > { %454 = vmatprep.subr.bf16.mxu0 %v646_v12 }
  0x1d   : > { %455 = vmatpush1.bf16.msra.mxu0 %v648_v13 }
  0x1e   : > { %456 = vmatprep.subr.bf16.mxu0 %v649_v14 }
  0x21   : > { %457 = vmatpush1.bf16.msra.mxu0 %v651_v16 }
  0x22   : > { %458 = vmatprep.subr.bf16.mxu0 %v652_v17 }
  0x25   : > { %459 = vmatpush1.bf16.msra.mxu0 %v654_v18  ;;  %v358_v18 = vsub.s32 0, %v757_v22 }
  0x26   : > { %460 = vmatprep.subr.bf16.mxu0 %v655_v19  ;;  %v354_v19 = vld [vmem:[%s802_s3] sm:$0x3] }
  0x27   : > { %v359_v21 = vrot.slane %v354_v19, %v358_v18 }
  0x29   : > { %461 = vmatpush1.bf16.msra.mxu0 %v657_v20  ;;  %v362_v20 = vsub.s32 1, %v757_v22 }
  0x85   : > { %v626_v25 = vpop.permute.xlu0 %625 }
  0x86   : > { %v628_v26 = vunpack.i.h.bf16 %v626_v25  ;;  %v627_v27 = vunpack.i.l.bf16 %v626_v25 }
  0x88   : > { %v222_v30 = vmul.f32 %v628_v26, %v575_v23  ;;  %v221_v31 = vmul.f32 %v627_v27, %v575_v23  ;;  %v363_v23 = vrot.slane %v354_v19, %v362_v20 }
  0x89   : > { %v631_v34 = vpop.permute.xlu0 %630 }
  0x8a   : > { %v633_v35 = vunpack.i.h.bf16 %v631_v34  ;;  %v632_v36 = vunpack.i.l.bf16 %v631_v34  ;;  %v231_v39 = vadd.f32 %v229_v29, %v222_v30  ;;  %v230_v40 = vadd.f32 %v228_v32, %v221_v31 }
  0x8c   : > { %v238_v41 = vmul.f32 %v633_v35, %v577_v33  ;;  %v237_v42 = vmul.f32 %v632_v36, %v577_v33 }
  0x8e   : > { %v239_v44 = vadd.f32 %v237_v42, %v230_v40  ;;  %v240_v45 = vadd.f32 %v238_v41, %v231_v39 }
  0x90   : > { %v246_v46 = vadd.f32 %v578_v43, %v239_v44  ;;  %v247_v47 = vadd.f32 %v578_v43, %v240_v45 }
  0x92   : > { %v248_v48 = vmax.f32 %v246_v46, 0.0  ;;  %v249_v49 = vmax.f32 %v247_v47, 0.0 }
  0x94   : > { %v289_v54 = vrot.slane %v248_v48, 7  ;;  %v290_v55 = vrot.slane %v249_v49, 7  ;;  %v296_v56 = vrot.slane %v248_v48, 1  ;;  %v297_v57 = vrot.slane %v249_v49, 1 }
  0x95   : > { %v316_v63 = vmul.f32 %v582_v50, %v249_v49  ;;  %v315_v4 = vmul.f32 %v582_v50, %v248_v48 }
  0x96   : > { %v292_v59 = vsel %vm291_vm2, %v289_v54, %v290_v55  ;;  %v293_v60 = vsel %vm291_vm2, %v290_v55, %v289_v54  ;;  %v299_v61 = vsel %vm298_vm3, %v296_v56, %v297_v57  ;;  %v300_v62 = vsel %vm298_vm3, %v297_v57, %v296_v56 }
  0x97   : > { %v294_v0 = vmul.f32 %v579_v52, %v293_v60  ;;  %v302_v1 = vmul.f32 %v580_v53, %v300_v62  ;;  %v309_v2 = vmul.f32 %v581_v58, %v292_v59  ;;  %v324_v10 = vmul.f32 %v583_v3, %v299_v61 }
  0x99   : > { %v308_v5 = vmul.f32 %v581_v58, %v294_v0  ;;  %v318_v6 = vadd.f32 %v316_v63, %v309_v2  ;;  %v325_v7 = vmul.f32 %v583_v3, %v302_v1 }
  0x9b   : > { %v317_v9 = vadd.f32 %v315_v4, %v308_v5  ;;  %v327_v11 = vadd.f32 %v325_v7, %v318_v6 }
  0x9d   : > { %v326_v12 = vadd.f32 %v324_v10, %v317_v9  ;;  %v334_v13 = vadd.f32 %v584_v8, %v327_v11 }
  0x9f   : > { %v333_v14 = vadd.f32 %v584_v8, %v326_v12  ;;  %v336_v16 = vmax.f32 %v334_v13, 0.0 }
  0xa1   : > { %v335_v15 = vmax.f32 %v333_v14, 0.0 }
  0xa3   : > { %v337_v17 = vpack.c.bf16 %v336_v16, %v335_v15 }
  0xa5   : > { %479 = vmatmul.mubr.bf16.vlgmr.msra.gmra.mxu0 %v337_v17 }
 0x165   : > { %v480_v24 = vpop.f32.mrf.mxu0 }
 0x166   : > { %v481_v25 = vadd.f32 %v480_v24, %v359_v21 }
 0x167   : > { %v482_v26 = vpop.f32.mrf.mxu0 }
 0x168   : > { %v483_v27 = vadd.f32 %v482_v26, %v363_v23  ;;  %v489_v29 = vmax.f32 %v481_v25, 0.0 }
 0x169   : > { %v484_v28 = vpop.f32.mrf.mxu0 }
 0x16a   : > { %v490_v30 = vmax.f32 %v483_v27, 0.0  ;;  %v485_v31 = vadd.f32 %v484_v28, %v359_v21 }
 0x16b   : > { %v486_v32 = vpop.f32.mrf.mxu0 }
 0x16c   : > { %v606_v33 = vpack.c.bf16 %v490_v30, %v489_v29  ;;  %v487_v34 = vadd.f32 %v486_v32, %v363_v23  ;;  %v491_v22 = vmax.f32 %v485_v31, 0.0 }
 0x16e   : > { %505 = vst [vmem:[%s201_s29] sm:$0xff] %v606_v33  ;;  %v492_v35 = vmax.f32 %v487_v34, 0.0 }
 0x170   : > { %v607_v36 = vpack.c.bf16 %v492_v35, %v491_v22 }
 0x172   : > { %506 = vst [vmem:[%s201_s29 + $0x8] sm:$0xff] %v607_v36 }
 0x173 PF: > { %s14_s15 = sadd.s32 1, %s664_s15  }
 0x174   : > { %p11_p4 = scmp.ge.s32.totalorder %s14_s15, 4  }
 0x176   :  { %13 = sbr.rel (!%p11_p4) target bundleno = 1 (0x1), region = 66 }

</bundles_post_ra>
